<compile_context>
chip_gen: v5e
topology: v5e:2x2
jax: 0.10.0
libtpu: 0.0.40
codegen_flags: <defaults>
</compile_context>

<pallas_src>
import jax
import jax.numpy as jnp
from jax.experimental import pallas as pl
from jax.experimental.pallas import tpu as pltpu


def _mixprop_matmul_kernel(x_ref, p_ref, b_ref, o_ref):
    """One (row-tile, col-tile) of the fused MixProp matmul.

    x_ref : (tm, K)   rows = (b, t), cols = (c, m)      K = c_in*N
    p_ref : (K, tn)   folded propagation+conv weight (grid-invariant)
    b_ref : (1, tn)   bias in (o, n) lane order (grid-invariant)
    o_ref : (tm, tn)  rows = (b, t), cols = (o, n)
    """
    o_ref[...] = (
        jnp.dot(x_ref[...], p_ref[...], preferred_element_type=jnp.float32)
        + b_ref[...]
    ).astype(o_ref.dtype)


def _pick_tile(dim, quantum, max_tile, prefer_multi_step=False):
    """Largest multiple of `quantum` dividing `dim`, <= max_tile (else full dim).

    With prefer_multi_step, prefer the largest such tile that still leaves
    >= 2 grid steps (so the 'parallel' axis can be sharded across v7x's 2 TCs).
    """
    cands = [t for t in range(quantum, min(dim, max_tile) + 1, quantum)
             if dim % t == 0]
    if not cands:
        return dim
    if prefer_multi_step:
        multi = [t for t in cands if dim // t >= 2]
        if multi:
            return max(multi)
    return max(cands)


def mixprop_pallas(x, adj, weight, bias, gdep, alpha):
    """x: (B, c_in, N, T), adj: (N, N), weight: (c_out, (gdep+1)*c_in),
    bias: (c_out,). Returns (B, c_out, N, T)."""
    B, c_in, N, T = x.shape
    c_out = weight.shape[0]
    c_total = (gdep + 1) * c_in
    assert weight.shape == (c_out, c_total)

    R = B * T          # matmul rows   (batch * time)
    K = c_in * N       # contraction   (channel, node)
    F = c_out * N      # output lanes  (out-channel, node)
    hp = jax.lax.Precision.HIGHEST
    alpha = float(alpha)
    beta = 1.0 - alpha

    # ---- grid-invariant precompute (scales with N/gdep only, not B/T) -------
    # normalized adjacency a = (adj + I) / rowsum(adj + I)
    adj_f = adj.astype(jnp.float32) + jnp.eye(N, dtype=jnp.float32)
    a = adj_f / jnp.sum(adj_f, axis=1, keepdims=True)                 # (N, N)

    # per-hop propagation matrices M_k  (h_k = M_k @ x along the node dim)
    apow = jnp.eye(N, dtype=jnp.float32)       # a^0
    lowsum = jnp.zeros((N, N), jnp.float32)    # alpha * sum_{j<k} beta^j a^j
    m_list = [jnp.eye(N, dtype=jnp.float32)]   # M_0 = I
    bk = 1.0
    for _ in range(gdep):
        lowsum = lowsum + (alpha * bk) * apow
        apow = jnp.matmul(a, apow, precision=hp)
        bk = bk * beta
        m_list.append(lowsum + bk * apow)
    m_stack = jnp.stack(m_list)                                       # (gdep+1, N, N)

    # fold the 1x1 conv into the node mixing:
    #   P[(c,m),(o,n)] = sum_k W[o, k*c_in + c] * M_k[n, m]
    w_k = weight.astype(jnp.float32).reshape(c_out, gdep + 1, c_in)   # [o, k, c]
    p = jnp.einsum('okc,knm->cmon', w_k, m_stack, precision=hp)
    p = p.reshape(K, F)

    # bias in (o, n) lane order
    bias_lane = jnp.repeat(bias.astype(jnp.float32), N).reshape(1, F)

    # ---- x: (B, c_in, N, T) -> (B*T, c_in*N)   [layout glue only] -----------
    x_rows = jnp.transpose(x.astype(jnp.float32), (0, 3, 1, 2)).reshape(R, K)

    # ---- pad to lane/sublane quanta so every store is unmasked --------------
    R_pad = ((R + 7) // 8) * 8
    F_pad = ((F + 127) // 128) * 128
    if R_pad != R:
        x_rows = jnp.pad(x_rows, ((0, R_pad - R), (0, 0)))
    if F_pad != F:
        p = jnp.pad(p, ((0, 0), (0, F_pad - F)))
        bias_lane = jnp.pad(bias_lane, ((0, 0), (0, F_pad - F)))

    # ---- VMEM-budget-aware tile selection (double-buffering aware) ----------
    try:
        vmem_cap = int(pltpu.get_tpu_info().vmem_capacity_bytes)
    except Exception:
        vmem_cap = 64 * 1024 * 1024        # conservative (v7x-sized) fallback
    budget = min(vmem_cap // 2, 48 * 1024 * 1024)

    max_tm, max_tn = 256, 1024
    while True:
        tm = _pick_tile(R_pad, 8, max_tm, prefer_multi_step=True)
        tn = _pick_tile(F_pad, 128, max_tn)
        # double-buffered f32 footprint of one grid step
        need = 2 * 4 * (tm * K + K * tn + tn + tm * tn)
        if need <= (budget * 3) // 4 or (max_tm <= 8 and max_tn <= 128):
            break
        if max_tn > 128:
            max_tn //= 2
        else:
            max_tm = max(8, max_tm // 2)

    grid_r = R_pad // tm
    grid_c = F_pad // tn

    out_flat = pl.pallas_call(
        _mixprop_matmul_kernel,
        out_shape=jax.ShapeDtypeStruct((R_pad, F_pad), jnp.float32),
        grid_spec=pltpu.PrefetchScalarGridSpec(
            num_scalar_prefetch=0,
            grid=(grid_r, grid_c),
            in_specs=[
                pl.BlockSpec((tm, K), lambda i, j: (i, 0)),      # x rows
                pl.BlockSpec((K, tn), lambda i, j: (0, j)),      # folded weight (grid-invariant)
                pl.BlockSpec((1, tn), lambda i, j: (0, j)),      # bias          (grid-invariant)
            ],
            out_specs=pl.BlockSpec((tm, tn), lambda i, j: (i, j)),
        ),
        compiler_params=pltpu.CompilerParams(
            dimension_semantics=("parallel", "parallel"),
            vmem_limit_bytes=int(budget),
        ),
    )(x_rows, p, bias_lane)

    if R_pad != R or F_pad != F:
        out_flat = out_flat[:R, :F]

    # ---- glue: (B*T, c_out*N) -> (B, c_out, N, T) ----------------------------
    return out_flat.reshape(B, T, c_out, N).transpose(0, 2, 3, 1)


def mixprop_ref(x, adj, weight, bias, gdep, alpha):
    """Pure-JAX reference mirroring the PyTorch forward exactly."""
    N = adj.shape[0]
    hp = jax.lax.Precision.HIGHEST
    adj = adj + jnp.eye(N, dtype=adj.dtype)
    d = adj.sum(1)
    a = adj / d[:, None]
    h = x
    out = [h]
    for _ in range(gdep):
        h = alpha * x + (1.0 - alpha) * jnp.einsum('ncwl,vw->ncvl', h, a,
                                                   precision=hp)
        out.append(h)
    ho = jnp.concatenate(out, axis=1)                  # (B, (gdep+1)*c_in, N, T)
    y = jnp.einsum('oc,bcnt->bont', weight, ho, precision=hp)
    return y + bias[None, :, None, None]


if __name__ == "__main__":
    key = jax.random.PRNGKey(0)
    B, c_in, N, T = 2, 4, 16, 8
    gdep, c_out, alpha = 2, 8, 0.05
    c_total = (gdep + 1) * c_in

    k1, k2, k3, k4 = jax.random.split(key, 4)
    x = jax.random.normal(k1, (B, c_in, N, T), dtype=jnp.float32)
    adj = jax.random.uniform(k2, (N, N), dtype=jnp.float32)

    # deterministic parameter init (Conv2d 1x1 ~ U(-1/sqrt(fan_in), 1/sqrt(fan_in)))
    bound = 1.0 / jnp.sqrt(jnp.float32(c_total))
    weight = jax.random.uniform(k3, (c_out, c_total), dtype=jnp.float32,
                                minval=-bound, maxval=bound)
    bias = jax.random.uniform(k4, (c_out,), dtype=jnp.float32,
                              minval=-bound, maxval=bound)

    out = mixprop_pallas(x, adj, weight, bias, gdep, alpha)
    out = jax.block_until_ready(out)

    ref = mixprop_ref(x, adj, weight, bias, gdep, alpha)
    assert out.shape == (B, c_out, N, T), out.shape
    assert jnp.allclose(out, ref, atol=1e-4, rtol=1e-4), \
        float(jnp.max(jnp.abs(out - ref)))

    print("KERNEL_OK")
</pallas_src>

<mosaic_0001>
module attributes {stable_mosaic.version = 11 : i64} {
  func.func @_mixprop_matmul_kernel(%arg0: i32, %arg1: i32, %arg2: memref<8x64xf32, #tpu.memory_space<vmem>>, %arg3: memref<64x128xf32, #tpu.memory_space<vmem>>, %arg4: memref<1x128xf32, #tpu.memory_space<vmem>>, %arg5: memref<8x128xf32, #tpu.memory_space<vmem>>) attributes {dimension_semantics = [#tpu.dimension_semantics<parallel>, #tpu.dimension_semantics<parallel>], iteration_bounds = array<i64: 2, 1>, scalar_prefetch = 0 : i64, scratch_operands = 0 : i64, tpu.core_type = #tpu.core_type<tc>, window_params = [{transform_indices = @transform_0, window_bounds = array<i64: 8, 64>}, {transform_indices = @transform_1, window_bounds = array<i64: 64, 128>}, {transform_indices = @transform_2, window_bounds = array<i64: 1, 128>}, {transform_indices = @transform_3, window_bounds = array<i64: 8, 128>}]} {
    %c0 = arith.constant 0 : index
    %c0_0 = arith.constant 0 : index
    %0 = vector.load %arg2[%c0, %c0_0] : memref<8x64xf32, #tpu.memory_space<vmem>>, vector<8x64xf32>
    %c0_1 = arith.constant 0 : index
    %c0_2 = arith.constant 0 : index
    %1 = vector.load %arg3[%c0_1, %c0_2] : memref<64x128xf32, #tpu.memory_space<vmem>>, vector<64x128xf32>
    %cst = arith.constant dense<0.000000e+00> : vector<8x128xf32>
    %2 = tpu.matmul %0, %1, %cst {dimension_numbers = #tpu.dot_dimension_numbers<[1], [0], [0], [1], [0, 0, 1, 1], [], []>} : vector<8x64xf32>, vector<64x128xf32>, vector<8x128xf32> -> vector<8x128xf32>
    %c0_3 = arith.constant 0 : index
    %c0_4 = arith.constant 0 : index
    %3 = vector.load %arg4[%c0_3, %c0_4] : memref<1x128xf32, #tpu.memory_space<vmem>>, vector<1x128xf32>
    %4 = vector.broadcast %3 : vector<1x128xf32> to vector<8x128xf32>
    %5 = arith.addf %2, %4 : vector<8x128xf32>
    %c0_5 = arith.constant 0 : index
    %c0_6 = arith.constant 0 : index
    %6 = vector.load %arg5[%c0_5, %c0_6] : memref<8x128xf32, #tpu.memory_space<vmem>>, vector<8x128xf32>
    tpu.vector_store %arg5[%c0_5, %c0_6], %5 {strides = array<i32>} : memref<8x128xf32, #tpu.memory_space<vmem>>, vector<8x128xf32>,
    return
  }
  func.func @transform_0(%arg0: i32, %arg1: i32) -> (i32, i32) {
    %c0_i32 = arith.constant 0 : i32
    %c0_i32_0 = arith.constant 0 : i32
    return %arg0, %c0_i32 : i32, i32
  }
  func.func @transform_1(%arg0: i32, %arg1: i32) -> (i32, i32) {
    %c0_i32 = arith.constant 0 : i32
    %c0_i32_0 = arith.constant 0 : i32
    return %c0_i32, %arg1 : i32, i32
  }
  func.func @transform_2(%arg0: i32, %arg1: i32) -> (i32, i32) {
    %c0_i32 = arith.constant 0 : i32
    %c0_i32_0 = arith.constant 0 : i32
    return %c0_i32, %arg1 : i32, i32
  }
  func.func @transform_3(%arg0: i32, %arg1: i32) -> (i32, i32) {
    %c0_i32 = arith.constant 0 : i32
    return %arg0, %arg1 : i32, i32
  }
}

</mosaic_0001>

<bundles_post_ra>
// kernel: tpu_custom_call.1
= control target key start
LH: loop header
LB: loop body
LE: loop exit
PB: predicated region body
PF: predicated region fallthrough
CT: control target
= control target key end

     0   :  { %8 = vsyncpa [#allocation3], 0  ;;  %s808_s0 = inlined_call_operand.hbm [shape: f32[16,64], index: 0, kind: input, shape index: {}]   ;;  %s809_s1 = inlined_call_operand.hbm [shape: f32[64,128], index: 1, kind: input, shape index: {}]   ;;  %s810_s2 = inlined_call_operand.vmem [shape: f32[1,128], index: 2, kind: input, shape index: {}]   ;;  %s811_s3 = inlined_call_operand.hbm [shape: f32[16,128], index: 3, kind: output, shape index: {}]  }
   0x1   :  { %10 = vsyncpa [#allocation3 + $0x1], 0 }
   0x2   :  { %11 = vsyncpa [#allocation6], 0 }
   0x3   :  { %12 = vsyncpa [#allocation4], 0 }
   0x4   :  { %14 = vsyncpa [#allocation4 + $0x1], 0  ;;  %s662_s12 = smov 0   ;;  %s664_s13 = smov 0  }
   0x5   :  { %s666_s14 = smov 0   ;;  %s668_s15 = smov 0  }
   0x6   :  { %s670_s16 = smov 0   ;;  %s672_s17 = smov 0  }
   0x7 LB: > { %s398_s18 = sadd.s32 4294967295, %s637_s17   ;;  %p400_p0 = scmp.ge.s32.totalorder %s637_s17, 1  ;;  %s637_s17 = sphi %s672_s17, %s20_s17   ;;  %s633_s16 = sphi %s670_s16, %s822_s16   ;;  %s629_s15 = sphi %s668_s15, %s821_s15   ;;  %s625_s14 = sphi %s666_s14, %s820_s14   ;;  %s621_s13 = sphi %s664_s13, %s819_s13   ;;  %s617_s12 = sphi %s662_s12, %s818_s12  }
   0x8   : > { %p694_p1 = scmp.eq.s32.totalorder %s398_s18, 0  ;;  %p143_p2 = scmp.lt.s32.totalorder %s637_s17, 3 }
   0x9   : > { %s156_s22 = sshll.u32 %s809_s1, 4  ;;  %s639_s24 = smov [#allocation5]   ;;  %s157_s22 = int_to_ptr.hbm [resolvable:$true] %s156_s22 }
   0xa   : > { %p702_p3 = pnand %p400_p0, %p143_p2  ;;  %s158_s25 = sshll.u32 %s639_s24, 4  ;;  %s159_s25 = int_to_ptr.vmem [resolvable:$true] %s158_s25 }
   0xb   : > { %p403_p6 = scmp.ge.s32.totalorder %s637_s17, 2  ;;  %s640_s26 = smov 128  }
   0xc   : > { %p423_p4 = pneg %p702_p3  ;;  %s641_s27 = smov 8  }
   0xd   : > { %s399_s28 = sadd.s32 4294967294, %s637_s17   ;;  %s32_s29 = sadd.s32 1, %s633_s16 }
   0xe   : > { %p424_p5 = pnand %p423_p4, %p694_p1  ;;  %s39_s30 = sadd.s32 1, %s625_s14 }
   0xf   : > { %p34_p7 = scmp.ge.s32.totalorder %s32_s29, 2  ;;  %p46_p8 = scmp.ne.s32.totalorder %s625_s14, %s621_s13 }
  0x10   : > { %426 = dma.hbm_to_vmem [thread:$0]  (!%p424_p5), %s157_s22, 1024, %s159_s25, [#allocation6], %s640_s26, %s640_s26, %s641_s27  }
  0x11   : > { %p47_p9 = scmp.eq.s32.totalorder %s637_s17, 0  ;;  %p52_p10 = scmp.ne.s32.totalorder %s621_s13, %s617_s12 }
  0x12   : > { %s824_s29 = smov (%p34_p7, %s32_s29), 0  ;;  %p130_p13 = scmp.eq.s32.totalorder %s398_s18, 1 }
  0x13   : > { %p721_p11 = por %p47_p9, %p46_p8  ;;  %p727_p12 = por %p694_p1, %p52_p10 }
  0x14   : > { %s36_s6 = ssub.s32 %s633_s16, %s824_s29  ;;  %p136_p2 = scmp.eq.s32.totalorder %s399_s28, 1 }
  0x15   : > { %p37_p0 = scmp.eq.s32.totalorder %s36_s6, 0  ;;  %p733_p4 = por %p130_p13, %p46_p8 }
  0x16   : > { %p436_p5 = scmp.lt.s32.totalorder %s637_s17, 2  ;;  %p741_p7 = por %p136_p2, %p52_p10 }
  0x17   : > { %s739_s8 = scalar_select %p37_p0, %s625_s14, %s39_s30  }
  0x18   : > { %s178_s10 = sand.u32 1, %s625_s14   ;;  %s405_s20 = sshll.u32 %s633_s16, 3 }
  0x19   : > { %s404_s11 = sshll.u32 %s178_s10, 3  ;;  %s186_s18 = scalar_lea.hbm %s808_s0, %s405_s20 }
  0x1a   : > { %s182_s24 = scalar_lea.vmem [#allocation2], %s404_s11  ;;  %s188_s26 = sshll.u32 %s186_s18, 4  ;;  %s189_s26 = int_to_ptr.hbm [resolvable:$true] %s188_s26 }
  0x1b   : > { %s190_s25 = sshll.u32 %s182_s24, 4  ;;  %p428_p8 = pnand %p436_p5, %p721_p11  ;;  %s191_s25 = int_to_ptr.vmem [resolvable:$true] %s190_s25 }
  0x1c   : > { %s179_s27 = scalar_lea.sflag [#allocation3], %s178_s10  ;;  %199 = sbr.rel (%p702_p3) target bundleno = 183 (0xb7), region = 32 }
  0x1d   : > { %430 = dma.hbm_to_vmem [thread:$0]  (!%p428_p8), %s189_s26, 128, %s191_s25, %s179_s27  }
  0x1e   : > { %s755_s28 = sand.u32 (!%p702_p3), 1, %s621_s13  }
  0x1f   : > { %s407_s30 = sshll.u32 (!%p702_p3), %s755_s28, 3  ;;  %s202_s6 = scalar_lea.sflag (!%p702_p3), [#allocation3], %s755_s28 }
  0x20   : > { %s205_s11 = scalar_lea.vmem (!%p702_p3), [#allocation2], %s407_s30 }
  0x21   : > { %604 = dma.done.wait (%p727_p12), %s202_s6, 128  }
  0x22   : > { %606 = vsyncadd (%p727_p12), %s202_s6, 4294967168 }
  0x23   : > { %608 = dma.done.wait (%p694_p1), [#allocation6], 1024  }
  0x24   : > { %610 = vsyncadd (%p694_p1), [#allocation6], 4294966272  ;;  %v248_v0 = vld [vmem:[#allocation5 + $0x38] sm:$0xff]  ;;  %v247_v1 = vld [vmem:[#allocation5 + $0x30] sm:$0xff]  ;;  %vm253_vm0 = vcmask 523264   ;;  %s412_s19 = sshll.u32 %s629_s15, 3 }
  0x25   : > { %265 = vmatpush.msra.mxu0 %v248_v0  ;;  %v246_v2 = vld [vmem:[#allocation5 + $0x28] sm:$0xff]  ;;  %v245_v3 = vld [vmem:[#allocation5 + $0x20] sm:$0xff]  ;;  %v244_v4 = vld [vmem:[#allocation5 + $0x18] sm:$0xff]  ;;  %s290_s5 = scalar_lea.hbm %s811_s3, %s412_s19  ;;  %s236_s21 = scalar_lea.vmem [#allocation7], %s407_s30 }
  0x26   : > { %v243_v5 = vld [vmem:[#allocation5 + $0x10] sm:$0xff]  ;;  %v242_v6 = vld [vmem:[#allocation5 + $0x8] sm:$0xff]  ;;  %v241_v7 = vld [vmem:[#allocation5] sm:$0xff]  ;;  %s292_s22 = sshll.u32 %s236_s21, 4  ;;  %s294_s18 = sshll.u32 %s290_s5, 4  ;;  %s293_s22 = int_to_ptr.vmem [resolvable:$true] %s292_s22  ;;  %s295_s18 = int_to_ptr.hbm [resolvable:$true] %s294_s18 }
  0x27   : > { %266 = vmatpush.msra.mxu0 %v247_v1  ;;  %v240_v8 = vld [vmem:[%s205_s11] sm:$0xff]  ;;  %s279_s24 = scalar_lea.sflag [#allocation4], %s755_s28  ;;  %s565_s25 = sshra.s32 %s295_s18, 4  ;;  %s566_s25 = int_to_ptr.hbm [resolvable:$true] %s565_s25 }
  0x28   : > { %v490_v9 = vld [vmem:[%s810_s2] ss:$0 sm:$0xff]  ;;  %s567_s15 = scalar_lea.hbm %s566_s25, 8  ;;  %s571_s6 = scalar_lea.hbm %s811_s3, 16 }
  0x29   : > { %267 = vmatpush.msra.mxu0 %v246_v2  ;;  %p568_p1 = scmp.ne.s32.totalorder %s566_s25, %s567_s15  ;;  %p572_p10 = scmp.lt.s32.totalorder %s566_s25, %s811_s3 }
  0x2a   : > { %p573_p11 = scmp.lt.s32.totalorder %s571_s6, %s567_s15 }
  0x2b   : > { %268 = vmatpush.msra.mxu0 %v245_v3  ;;  %p569_p3 = pnand %p568_p1, %p733_p4 }
  0x2c   : > { %p574_p12 = por %p573_p11, %p572_p10 }
  0x2d   : > { %269 = vmatpush.msra.mxu0 %v244_v4  ;;  %p570_p9 = pneg %p569_p3 }
  0x2f   : > { %270 = vmatpush.msra.mxu0 %v243_v5  ;;  %p575_p13 = pnand %p574_p12, %p570_p9 }
  0x31   : > { %271 = vmatpush.msra.mxu0 %v242_v6 }
  0x33   : > { %272 = vmatpush.msra.mxu0 %v241_v7 }
  0x34   : > { %410 = vmatmul.msk.f32.vlgmr.msra.gmra.mxu0 %vm253_vm0, %v240_v8 }
  0xb1   : > { %v274_v10 = vpop.f32.mrf.mxu0 }
  0xb2   : > { %v275_v11 = vadd.f32 %v490_v9, %v274_v10 }
  0xb4   : > { %277 = vst [vmem:[%s236_s21] sm:$0xff] %v275_v11 }
  0xb5   : > { %578 = shalt.err (!%p575_p13)
}
  0xb6   : > { %421 = dma.vmem_to_hbm [thread:$0]  (%p733_p4), %s293_s22, 128, %s295_s18, %s279_s24  }
  0xb7 PF: > { %s306_s28 = sand.u32 1, %s617_s12   ;;  %p432_p0 = pnand %p403_p6, %p741_p7 }
  0xb8   : > { %s307_s19 = scalar_lea.sflag [#allocation4], %s306_s28 }
  0xb9   : > { %p433_p2 = pneg %p432_p0 }
  0xbb   : > { %612 = dma.done.wait (%p433_p2), %s307_s19, 128  }
  0xbc   : > { %614 = vsyncadd (%p433_p2), %s307_s19, 4294967168  ;;  %s20_s17 = sadd.s32 1, %s637_s17   ;;  %s818_s12 = smov %s621_s13 }
  0xbd   : > { %p17_p5 = scmp.ge.s32.totalorder %s20_s17, 4   ;;  %s819_s13 = smov %s625_s14 }
  0xbe   : > { %s820_s14 = smov %s739_s8  ;;  %s821_s15 = smov %s633_s16 }
  0xbf   : > { %s822_s16 = smov %s824_s29  ;;  %19 = sbr.rel (!%p17_p5) target bundleno = 7 (0x7), region = 85 }
  0xc4   :  { %313 = vsyncpa [#allocation3], 1 }
  0xc5   :  { %315 = vsyncpa [#allocation3 + $0x1], 1 }
  0xc6   :  { %316 = vsyncpa [#allocation6], 1 }
  0xc7   :  { %317 = vsyncpa [#allocation4], 1 }
  0xc8   :  { %319 = vsyncpa [#allocation4 + $0x1], 1 }

</bundles_post_ra>
